<compile_context>
chip_gen: v6e
topology: v6e:2x2x1
jax: 0.10.0
libtpu: 0.0.40
codegen_flags: <defaults>
</compile_context>

<pallas_src>
import functools

import jax
import jax.numpy as jnp
from jax import lax
from jax.experimental import pallas as pl
from jax.experimental.pallas import tpu as pltpu

KH = KW = 3  # Conv2d kernel size from the module: Conv2d(2, 2, 3)


def _conv_bias_add_act_kernel(x_ref, *rest, cin, cout, oh, ow, activation,
                              has_residual):
    """Fused: valid 3x3 conv + bias + (optional) alpha*y + activation.

    Block layouts (per grid step = one batch sample):
      x_ref:     VMEM (1, Cin, H, W)
      y_ref:     VMEM (1, Cout, OH, OW)           [only if has_residual]
      w_ref:     SMEM (Cout*Cin*KH*KW,)            flattened OIHW weights
      b_ref:     SMEM (Cout,)
      alpha_ref: SMEM (1,)                         [only if has_residual]
      o_ref:     VMEM (1, Cout, OH, OW)
    """
    if has_residual:
        y_ref, w_ref, b_ref, alpha_ref, o_ref = rest
    else:
        w_ref, b_ref, o_ref = rest
        y_ref = alpha_ref = None

    # f32 accumulators per output channel, seeded with the bias.
    accs = [jnp.zeros((oh, ow), jnp.float32) + b_ref[co] for co in range(cout)]

    # Direct convolution as a static sum of shifted-window MACs (VPU).
    # Loop order (ci, kh, kw) outer / co inner so every shifted window is
    # materialized exactly once and reused for all output channels.
    for ci in range(cin):
        x_c = x_ref[0, ci].astype(jnp.float32)             # (H, W)
        for kh in range(KH):
            for kw in range(KW):
                win = x_c[kh:kh + oh, kw:kw + ow]          # (OH, OW), built once
                for co in range(cout):
                    wv = w_ref[((co * cin + ci) * KH + kh) * KW + kw]
                    accs[co] = accs[co] + wv * win

    for co in range(cout):
        out = accs[co]
        if has_residual:
            out = out + alpha_ref[0] * y_ref[0, co].astype(jnp.float32)
        if activation == "relu":
            out = jnp.maximum(out, 0.0)
        o_ref[0, co] = out.astype(o_ref.dtype)


def conv_bias_add_activation(x, weight, bias=None, y=None, alpha=1.0,
                             activation="identity"):
    """JAX wrapper mirroring ConvBiasAddActivation.forward(x, y, alpha)."""
    if activation not in ("identity", "relu"):
        raise ValueError(f"unsupported activation: {activation!r}")

    n, cin, h, w = x.shape
    cout = weight.shape[0]
    oh, ow = h - KH + 1, w - KW + 1
    has_residual = y is not None

    # TODO(synk): for realistic channel counts (Cin*KH*KW and Cout >= ~64)
    # switch to an im2col + jnp.dot MXU path instead of the unrolled VPU MACs.
    # TODO(synk): with OW < 128 the output stores are lane-masked; packing
    # OH*OW into the lane dim would need an in-kernel relayout that Mosaic may
    # not lower for non-tile-aligned (14,14) shapes, so output stays NCHW here.

    w_flat = weight.astype(jnp.float32).reshape(-1)          # OIHW flattened
    b = (bias if bias is not None
         else jnp.zeros((cout,), jnp.float32)).astype(jnp.float32)

    kernel = functools.partial(
        _conv_bias_add_act_kernel, cin=cin, cout=cout, oh=oh, ow=ow,
        activation=activation, has_residual=has_residual)

    x_spec = pl.BlockSpec((1, cin, h, w), lambda i: (i, 0, 0, 0))
    io_spec = pl.BlockSpec((1, cout, oh, ow), lambda i: (i, 0, 0, 0))
    smem_spec = pl.BlockSpec(memory_space=pltpu.MemorySpace.SMEM)

    in_specs = [x_spec]
    args = [x]
    if has_residual:
        in_specs.append(io_spec)                             # y
        args.append(y)
    in_specs += [smem_spec, smem_spec]                       # weight, bias
    args += [w_flat, b]
    if has_residual:
        in_specs.append(smem_spec)                           # alpha
        args.append(jnp.asarray([alpha], jnp.float32))

    return pl.pallas_call(
        kernel,
        grid=(n,),
        out_shape=jax.ShapeDtypeStruct((n, cout, oh, ow), x.dtype),
        in_specs=in_specs,
        out_specs=io_spec,
        compiler_params=pltpu.CompilerParams(
            dimension_semantics=("parallel",),
            vmem_limit_bytes=32 * 1024 * 1024),
    )(*args)


def _reference(x, weight, bias, y, alpha, activation):
    out = lax.conv_general_dilated(
        x.astype(jnp.float32), weight.astype(jnp.float32),
        window_strides=(1, 1), padding="VALID",
        dimension_numbers=("NCHW", "OIHW", "NCHW"))
    out = out + bias[None, :, None, None]
    if y is not None:
        out = out + alpha * y.astype(jnp.float32)
    if activation == "relu":
        out = jnp.maximum(out, 0.0)
    return out


if __name__ == "__main__":
    key = jax.random.PRNGKey(0)
    kx, ky, kw, kb = jax.random.split(key, 4)

    N, CIN, H, W = 2, 2, 16, 16
    COUT = 2
    OH, OW = H - KH + 1, W - KW + 1

    # Deterministic parameter init (PyTorch-style U(-1/sqrt(fan_in), +...)).
    fan_in = CIN * KH * KW
    bound = 1.0 / jnp.sqrt(float(fan_in))
    weight = jax.random.uniform(kw, (COUT, CIN, KH, KW), jnp.float32,
                                -bound, bound)
    bias = jax.random.uniform(kb, (COUT,), jnp.float32, -bound, bound)

    x = jax.random.normal(kx, (N, CIN, H, W), jnp.float32)
    y = jax.random.normal(ky, (N, COUT, OH, OW), jnp.float32)
    alpha = 0.5

    # Case 1: conv + bias + scaled residual add + ReLU activation.
    out_relu = conv_bias_add_activation(x, weight, bias, y=y, alpha=alpha,
                                        activation="relu")
    out_relu = jax.block_until_ready(out_relu)
    ref_relu = _reference(x, weight, bias, y, alpha, "relu")

    # Case 2: default module config — Identity activation, no residual
    # (kernel variant with no y input: no zero-tensor DMA at all).
    out_id = conv_bias_add_activation(x, weight, bias, y=None,
                                      activation="identity")
    out_id = jax.block_until_ready(out_id)
    ref_id = _reference(x, weight, bias, None, 1.0, "identity")

    assert out_relu.shape == (N, COUT, OH, OW)
    assert jnp.allclose(out_relu, ref_relu, atol=1e-5, rtol=1e-5)
    assert jnp.allclose(out_id, ref_id, atol=1e-5, rtol=1e-5)

    print("KERNEL_OK")
</pallas_src>

<mosaic_0001>
module attributes {stable_mosaic.version = 11 : i64} {
  func.func @_conv_bias_add_act_kernel(%arg0: i32, %arg1: memref<1x2x16x16xf32, #tpu.memory_space<vmem>>, %arg2: memref<1x2x14x14xf32, #tpu.memory_space<vmem>>, %arg3: memref<36xf32, #tpu.memory_space<smem>>, %arg4: memref<2xf32, #tpu.memory_space<smem>>, %arg5: memref<1xf32, #tpu.memory_space<smem>>, %arg6: memref<1x2x14x14xf32, #tpu.memory_space<vmem>>) attributes {dimension_semantics = [#tpu.dimension_semantics<parallel>], iteration_bounds = array<i64: 2>, scalar_prefetch = 0 : i64, scratch_operands = 0 : i64, tpu.core_type = #tpu.core_type<tc>, window_params = [{transform_indices = @transform_0, window_bounds = array<i64: 1, 2, 16, 16>}, {transform_indices = @transform_1, window_bounds = array<i64: 1, 2, 14, 14>}, {transform_indices = @transform_2, window_bounds = array<i64: 36>}, {transform_indices = @transform_3, window_bounds = array<i64: 2>}, {transform_indices = @transform_4, window_bounds = array<i64: 1>}, {transform_indices = @transform_5, window_bounds = array<i64: 1, 2, 14, 14>}]} {
    %cst = arith.constant 0.000000e+00 : f32
    %0 = vector.broadcast %cst : f32 to vector<14x14xf32>
    %c0 = arith.constant 0 : index
    %1 = memref.load %arg4[%c0] : memref<2xf32, #tpu.memory_space<smem>>
    %2 = vector.broadcast %1 : f32 to vector<14x14xf32>
    %3 = arith.addf %0, %2 : vector<14x14xf32>
    %cst_0 = arith.constant 0.000000e+00 : f32
    %4 = vector.broadcast %cst_0 : f32 to vector<14x14xf32>
    %c1 = arith.constant 1 : index
    %5 = memref.load %arg4[%c1] : memref<2xf32, #tpu.memory_space<smem>>
    %6 = vector.broadcast %5 : f32 to vector<14x14xf32>
    %7 = arith.addf %4, %6 : vector<14x14xf32>
    %c0_1 = arith.constant 0 : index
    %c0_2 = arith.constant 0 : index
    %c0_3 = arith.constant 0 : index
    %c0_4 = arith.constant 0 : index
    %8 = vector.load %arg1[%c0_1, %c0_2, %c0_3, %c0_4] : memref<1x2x16x16xf32, #tpu.memory_space<vmem>>, vector<1x1x16x16xf32>
    %9 = vector.shape_cast %8 : vector<1x1x16x16xf32> to vector<16x16xf32>
    %10 = vector.extract_strided_slice %9 {offsets = [0, 0], sizes = [14, 14], strides = [1, 1]} : vector<16x16xf32> to vector<14x14xf32>
    %c0_5 = arith.constant 0 : index
    %11 = memref.load %arg3[%c0_5] : memref<36xf32, #tpu.memory_space<smem>>
    %12 = vector.broadcast %11 : f32 to vector<14x14xf32>
    %13 = arith.mulf %12, %10 : vector<14x14xf32>
    %14 = arith.addf %3, %13 : vector<14x14xf32>
    %c18 = arith.constant 18 : index
    %15 = memref.load %arg3[%c18] : memref<36xf32, #tpu.memory_space<smem>>
    %16 = vector.broadcast %15 : f32 to vector<14x14xf32>
    %17 = arith.mulf %16, %10 : vector<14x14xf32>
    %18 = arith.addf %7, %17 : vector<14x14xf32>
    %19 = vector.extract_strided_slice %9 {offsets = [0, 1], sizes = [14, 14], strides = [1, 1]} : vector<16x16xf32> to vector<14x14xf32>
    %c1_6 = arith.constant 1 : index
    %20 = memref.load %arg3[%c1_6] : memref<36xf32, #tpu.memory_space<smem>>
    %21 = vector.broadcast %20 : f32 to vector<14x14xf32>
    %22 = arith.mulf %21, %19 : vector<14x14xf32>
    %23 = arith.addf %14, %22 : vector<14x14xf32>
    %c19 = arith.constant 19 : index
    %24 = memref.load %arg3[%c19] : memref<36xf32, #tpu.memory_space<smem>>
    %25 = vector.broadcast %24 : f32 to vector<14x14xf32>
    %26 = arith.mulf %25, %19 : vector<14x14xf32>
    %27 = arith.addf %18, %26 : vector<14x14xf32>
    %28 = vector.extract_strided_slice %9 {offsets = [0, 2], sizes = [14, 14], strides = [1, 1]} : vector<16x16xf32> to vector<14x14xf32>
    %c2 = arith.constant 2 : index
    %29 = memref.load %arg3[%c2] : memref<36xf32, #tpu.memory_space<smem>>
    %30 = vector.broadcast %29 : f32 to vector<14x14xf32>
    %31 = arith.mulf %30, %28 : vector<14x14xf32>
    %32 = arith.addf %23, %31 : vector<14x14xf32>
    %c20 = arith.constant 20 : index
    %33 = memref.load %arg3[%c20] : memref<36xf32, #tpu.memory_space<smem>>
    %34 = vector.broadcast %33 : f32 to vector<14x14xf32>
    %35 = arith.mulf %34, %28 : vector<14x14xf32>
    %36 = arith.addf %27, %35 : vector<14x14xf32>
    %37 = vector.extract_strided_slice %9 {offsets = [1, 0], sizes = [14, 14], strides = [1, 1]} : vector<16x16xf32> to vector<14x14xf32>
    %c3 = arith.constant 3 : index
    %38 = memref.load %arg3[%c3] : memref<36xf32, #tpu.memory_space<smem>>
    %39 = vector.broadcast %38 : f32 to vector<14x14xf32>
    %40 = arith.mulf %39, %37 : vector<14x14xf32>
    %41 = arith.addf %32, %40 : vector<14x14xf32>
    %c21 = arith.constant 21 : index
    %42 = memref.load %arg3[%c21] : memref<36xf32, #tpu.memory_space<smem>>
    %43 = vector.broadcast %42 : f32 to vector<14x14xf32>
    %44 = arith.mulf %43, %37 : vector<14x14xf32>
    %45 = arith.addf %36, %44 : vector<14x14xf32>
    %46 = vector.extract_strided_slice %9 {offsets = [1, 1], sizes = [14, 14], strides = [1, 1]} : vector<16x16xf32> to vector<14x14xf32>
    %c4 = arith.constant 4 : index
    %47 = memref.load %arg3[%c4] : memref<36xf32, #tpu.memory_space<smem>>
    %48 = vector.broadcast %47 : f32 to vector<14x14xf32>
    %49 = arith.mulf %48, %46 : vector<14x14xf32>
    %50 = arith.addf %41, %49 : vector<14x14xf32>
    %c22 = arith.constant 22 : index
    %51 = memref.load %arg3[%c22] : memref<36xf32, #tpu.memory_space<smem>>
    %52 = vector.broadcast %51 : f32 to vector<14x14xf32>
    %53 = arith.mulf %52, %46 : vector<14x14xf32>
    %54 = arith.addf %45, %53 : vector<14x14xf32>
    %55 = vector.extract_strided_slice %9 {offsets = [1, 2], sizes = [14, 14], strides = [1, 1]} : vector<16x16xf32> to vector<14x14xf32>
    %c5 = arith.constant 5 : index
    %56 = memref.load %arg3[%c5] : memref<36xf32, #tpu.memory_space<smem>>
    %57 = vector.broadcast %56 : f32 to vector<14x14xf32>
    %58 = arith.mulf %57, %55 : vector<14x14xf32>
    %59 = arith.addf %50, %58 : vector<14x14xf32>
    %c23 = arith.constant 23 : index
    %60 = memref.load %arg3[%c23] : memref<36xf32, #tpu.memory_space<smem>>
    %61 = vector.broadcast %60 : f32 to vector<14x14xf32>
    %62 = arith.mulf %61, %55 : vector<14x14xf32>
    %63 = arith.addf %54, %62 : vector<14x14xf32>
    %64 = vector.extract_strided_slice %9 {offsets = [2, 0], sizes = [14, 14], strides = [1, 1]} : vector<16x16xf32> to vector<14x14xf32>
    %c6 = arith.constant 6 : index
    %65 = memref.load %arg3[%c6] : memref<36xf32, #tpu.memory_space<smem>>
    %66 = vector.broadcast %65 : f32 to vector<14x14xf32>
    %67 = arith.mulf %66, %64 : vector<14x14xf32>
    %68 = arith.addf %59, %67 : vector<14x14xf32>
    %c24 = arith.constant 24 : index
    %69 = memref.load %arg3[%c24] : memref<36xf32, #tpu.memory_space<smem>>
    %70 = vector.broadcast %69 : f32 to vector<14x14xf32>
    %71 = arith.mulf %70, %64 : vector<14x14xf32>
    %72 = arith.addf %63, %71 : vector<14x14xf32>
    %73 = vector.extract_strided_slice %9 {offsets = [2, 1], sizes = [14, 14], strides = [1, 1]} : vector<16x16xf32> to vector<14x14xf32>
    %c7 = arith.constant 7 : index
    %74 = memref.load %arg3[%c7] : memref<36xf32, #tpu.memory_space<smem>>
    %75 = vector.broadcast %74 : f32 to vector<14x14xf32>
    %76 = arith.mulf %75, %73 : vector<14x14xf32>
    %77 = arith.addf %68, %76 : vector<14x14xf32>
    %c25 = arith.constant 25 : index
    %78 = memref.load %arg3[%c25] : memref<36xf32, #tpu.memory_space<smem>>
    %79 = vector.broadcast %78 : f32 to vector<14x14xf32>
    %80 = arith.mulf %79, %73 : vector<14x14xf32>
    %81 = arith.addf %72, %80 : vector<14x14xf32>
    %82 = vector.extract_strided_slice %9 {offsets = [2, 2], sizes = [14, 14], strides = [1, 1]} : vector<16x16xf32> to vector<14x14xf32>
    %c8 = arith.constant 8 : index
    %83 = memref.load %arg3[%c8] : memref<36xf32, #tpu.memory_space<smem>>
    %84 = vector.broadcast %83 : f32 to vector<14x14xf32>
    %85 = arith.mulf %84, %82 : vector<14x14xf32>
    %86 = arith.addf %77, %85 : vector<14x14xf32>
    %c26 = arith.constant 26 : index
    %87 = memref.load %arg3[%c26] : memref<36xf32, #tpu.memory_space<smem>>
    %88 = vector.broadcast %87 : f32 to vector<14x14xf32>
    %89 = arith.mulf %88, %82 : vector<14x14xf32>
    %90 = arith.addf %81, %89 : vector<14x14xf32>
    %c0_7 = arith.constant 0 : index
    %c1_8 = arith.constant 1 : index
    %c0_9 = arith.constant 0 : index
    %c0_10 = arith.constant 0 : index
    %91 = vector.load %arg1[%c0_7, %c1_8, %c0_9, %c0_10] : memref<1x2x16x16xf32, #tpu.memory_space<vmem>>, vector<1x1x16x16xf32>
    %92 = vector.shape_cast %91 : vector<1x1x16x16xf32> to vector<16x16xf32>
    %93 = vector.extract_strided_slice %92 {offsets = [0, 0], sizes = [14, 14], strides = [1, 1]} : vector<16x16xf32> to vector<14x14xf32>
    %c9 = arith.constant 9 : index
    %94 = memref.load %arg3[%c9] : memref<36xf32, #tpu.memory_space<smem>>
    %95 = vector.broadcast %94 : f32 to vector<14x14xf32>
    %96 = arith.mulf %95, %93 : vector<14x14xf32>
    %97 = arith.addf %86, %96 : vector<14x14xf32>
    %c27 = arith.constant 27 : index
    %98 = memref.load %arg3[%c27] : memref<36xf32, #tpu.memory_space<smem>>
    %99 = vector.broadcast %98 : f32 to vector<14x14xf32>
    %100 = arith.mulf %99, %93 : vector<14x14xf32>
    %101 = arith.addf %90, %100 : vector<14x14xf32>
    %102 = vector.extract_strided_slice %92 {offsets = [0, 1], sizes = [14, 14], strides = [1, 1]} : vector<16x16xf32> to vector<14x14xf32>
    %c10 = arith.constant 10 : index
    %103 = memref.load %arg3[%c10] : memref<36xf32, #tpu.memory_space<smem>>
    %104 = vector.broadcast %103 : f32 to vector<14x14xf32>
    %105 = arith.mulf %104, %102 : vector<14x14xf32>
    %106 = arith.addf %97, %105 : vector<14x14xf32>
    %c28 = arith.constant 28 : index
    %107 = memref.load %arg3[%c28] : memref<36xf32, #tpu.memory_space<smem>>
    %108 = vector.broadcast %107 : f32 to vector<14x14xf32>
    %109 = arith.mulf %108, %102 : vector<14x14xf32>
    %110 = arith.addf %101, %109 : vector<14x14xf32>
    %111 = vector.extract_strided_slice %92 {offsets = [0, 2], sizes = [14, 14], strides = [1, 1]} : vector<16x16xf32> to vector<14x14xf32>
    %c11 = arith.constant 11 : index
    %112 = memref.load %arg3[%c11] : memref<36xf32, #tpu.memory_space<smem>>
    %113 = vector.broadcast %112 : f32 to vector<14x14xf32>
    %114 = arith.mulf %113, %111 : vector<14x14xf32>
    %115 = arith.addf %106, %114 : vector<14x14xf32>
    %c29 = arith.constant 29 : index
    %116 = memref.load %arg3[%c29] : memref<36xf32, #tpu.memory_space<smem>>
    %117 = vector.broadcast %116 : f32 to vector<14x14xf32>
    %118 = arith.mulf %117, %111 : vector<14x14xf32>
    %119 = arith.addf %110, %118 : vector<14x14xf32>
    %120 = vector.extract_strided_slice %92 {offsets = [1, 0], sizes = [14, 14], strides = [1, 1]} : vector<16x16xf32> to vector<14x14xf32>
    %c12 = arith.constant 12 : index
    %121 = memref.load %arg3[%c12] : memref<36xf32, #tpu.memory_space<smem>>
    %122 = vector.broadcast %121 : f32 to vector<14x14xf32>
    %123 = arith.mulf %122, %120 : vector<14x14xf32>
    %124 = arith.addf %115, %123 : vector<14x14xf32>
    %c30 = arith.constant 30 : index
    %125 = memref.load %arg3[%c30] : memref<36xf32, #tpu.memory_space<smem>>
    %126 = vector.broadcast %125 : f32 to vector<14x14xf32>
    %127 = arith.mulf %126, %120 : vector<14x14xf32>
    %128 = arith.addf %119, %127 : vector<14x14xf32>
    %129 = vector.extract_strided_slice %92 {offsets = [1, 1], sizes = [14, 14], strides = [1, 1]} : vector<16x16xf32> to vector<14x14xf32>
    %c13 = arith.constant 13 : index
    %130 = memref.load %arg3[%c13] : memref<36xf32, #tpu.memory_space<smem>>
    %131 = vector.broadcast %130 : f32 to vector<14x14xf32>
    %132 = arith.mulf %131, %129 : vector<14x14xf32>
    %133 = arith.addf %124, %132 : vector<14x14xf32>
    %c31 = arith.constant 31 : index
    %134 = memref.load %arg3[%c31] : memref<36xf32, #tpu.memory_space<smem>>
    %135 = vector.broadcast %134 : f32 to vector<14x14xf32>
    %136 = arith.mulf %135, %129 : vector<14x14xf32>
    %137 = arith.addf %128, %136 : vector<14x14xf32>
    %138 = vector.extract_strided_slice %92 {offsets = [1, 2], sizes = [14, 14], strides = [1, 1]} : vector<16x16xf32> to vector<14x14xf32>
    %c14 = arith.constant 14 : index
    %139 = memref.load %arg3[%c14] : memref<36xf32, #tpu.memory_space<smem>>
    %140 = vector.broadcast %139 : f32 to vector<14x14xf32>
    %141 = arith.mulf %140, %138 : vector<14x14xf32>
    %142 = arith.addf %133, %141 : vector<14x14xf32>
    %c32 = arith.constant 32 : index
    %143 = memref.load %arg3[%c32] : memref<36xf32, #tpu.memory_space<smem>>
    %144 = vector.broadcast %143 : f32 to vector<14x14xf32>
    %145 = arith.mulf %144, %138 : vector<14x14xf32>
    %146 = arith.addf %137, %145 : vector<14x14xf32>
    %147 = vector.extract_strided_slice %92 {offsets = [2, 0], sizes = [14, 14], strides = [1, 1]} : vector<16x16xf32> to vector<14x14xf32>
    %c15 = arith.constant 15 : index
    %148 = memref.load %arg3[%c15] : memref<36xf32, #tpu.memory_space<smem>>
    %149 = vector.broadcast %148 : f32 to vector<14x14xf32>
    %150 = arith.mulf %149, %147 : vector<14x14xf32>
    %151 = arith.addf %142, %150 : vector<14x14xf32>
    %c33 = arith.constant 33 : index
    %152 = memref.load %arg3[%c33] : memref<36xf32, #tpu.memory_space<smem>>
    %153 = vector.broadcast %152 : f32 to vector<14x14xf32>
    %154 = arith.mulf %153, %147 : vector<14x14xf32>
    %155 = arith.addf %146, %154 : vector<14x14xf32>
    %156 = vector.extract_strided_slice %92 {offsets = [2, 1], sizes = [14, 14], strides = [1, 1]} : vector<16x16xf32> to vector<14x14xf32>
    %c16 = arith.constant 16 : index
    %157 = memref.load %arg3[%c16] : memref<36xf32, #tpu.memory_space<smem>>
    %158 = vector.broadcast %157 : f32 to vector<14x14xf32>
    %159 = arith.mulf %158, %156 : vector<14x14xf32>
    %160 = arith.addf %151, %159 : vector<14x14xf32>
    %c34 = arith.constant 34 : index
    %161 = memref.load %arg3[%c34] : memref<36xf32, #tpu.memory_space<smem>>
    %162 = vector.broadcast %161 : f32 to vector<14x14xf32>
    %163 = arith.mulf %162, %156 : vector<14x14xf32>
    %164 = arith.addf %155, %163 : vector<14x14xf32>
    %165 = vector.extract_strided_slice %92 {offsets = [2, 2], sizes = [14, 14], strides = [1, 1]} : vector<16x16xf32> to vector<14x14xf32>
    %c17 = arith.constant 17 : index
    %166 = memref.load %arg3[%c17] : memref<36xf32, #tpu.memory_space<smem>>
    %167 = vector.broadcast %166 : f32 to vector<14x14xf32>
    %168 = arith.mulf %167, %165 : vector<14x14xf32>
    %169 = arith.addf %160, %168 : vector<14x14xf32>
    %c35 = arith.constant 35 : index
    %170 = memref.load %arg3[%c35] : memref<36xf32, #tpu.memory_space<smem>>
    %171 = vector.broadcast %170 : f32 to vector<14x14xf32>
    %172 = arith.mulf %171, %165 : vector<14x14xf32>
    %173 = arith.addf %164, %172 : vector<14x14xf32>
    %c0_11 = arith.constant 0 : index
    %174 = memref.load %arg5[%c0_11] : memref<1xf32, #tpu.memory_space<smem>>
    %c0_12 = arith.constant 0 : index
    %c0_13 = arith.constant 0 : index
    %c0_14 = arith.constant 0 : index
    %c0_15 = arith.constant 0 : index
    %175 = vector.load %arg2[%c0_12, %c0_13, %c0_14, %c0_15] : memref<1x2x14x14xf32, #tpu.memory_space<vmem>>, vector<1x1x14x14xf32>
    %176 = vector.shape_cast %175 : vector<1x1x14x14xf32> to vector<14x14xf32>
    %177 = vector.broadcast %174 : f32 to vector<14x14xf32>
    %178 = arith.mulf %177, %176 : vector<14x14xf32>
    %179 = arith.addf %169, %178 : vector<14x14xf32>
    %cst_16 = arith.constant 0.000000e+00 : f32
    %180 = vector.broadcast %cst_16 : f32 to vector<14x14xf32>
    %181 = arith.maximumf %179, %180 : vector<14x14xf32>
    %c0_17 = arith.constant 0 : index
    %c0_18 = arith.constant 0 : index
    %c0_19 = arith.constant 0 : index
    %c0_20 = arith.constant 0 : index
    %182 = vector.load %arg6[%c0_17, %c0_18, %c0_19, %c0_20] : memref<1x2x14x14xf32, #tpu.memory_space<vmem>>, vector<1x1x14x14xf32>
    %183 = vector.shape_cast %182 : vector<1x1x14x14xf32> to vector<14x14xf32>
    %184 = vector.shape_cast %181 : vector<14x14xf32> to vector<1x1x14x14xf32>
    tpu.vector_store %arg6[%c0_17, %c0_18, %c0_19, %c0_20], %184 {strides = array<i32>} : memref<1x2x14x14xf32, #tpu.memory_space<vmem>>, vector<1x1x14x14xf32>,
    %c0_21 = arith.constant 0 : index
    %185 = memref.load %arg5[%c0_21] : memref<1xf32, #tpu.memory_space<smem>>
    %c0_22 = arith.constant 0 : index
    %c1_23 = arith.constant 1 : index
    %c0_24 = arith.constant 0 : index
    %c0_25 = arith.constant 0 : index
    %186 = vector.load %arg2[%c0_22, %c1_23, %c0_24, %c0_25] : memref<1x2x14x14xf32, #tpu.memory_space<vmem>>, vector<1x1x14x14xf32>
    %187 = vector.shape_cast %186 : vector<1x1x14x14xf32> to vector<14x14xf32>
    %188 = vector.broadcast %185 : f32 to vector<14x14xf32>
    %189 = arith.mulf %188, %187 : vector<14x14xf32>
    %190 = arith.addf %173, %189 : vector<14x14xf32>
    %cst_26 = arith.constant 0.000000e+00 : f32
    %191 = vector.broadcast %cst_26 : f32 to vector<14x14xf32>
    %192 = arith.maximumf %190, %191 : vector<14x14xf32>
    %c0_27 = arith.constant 0 : index
    %c1_28 = arith.constant 1 : index
    %c0_29 = arith.constant 0 : index
    %c0_30 = arith.constant 0 : index
    %193 = vector.load %arg6[%c0_27, %c1_28, %c0_29, %c0_30] : memref<1x2x14x14xf32, #tpu.memory_space<vmem>>, vector<1x1x14x14xf32>
    %194 = vector.shape_cast %193 : vector<1x1x14x14xf32> to vector<14x14xf32>
    %195 = vector.shape_cast %192 : vector<14x14xf32> to vector<1x1x14x14xf32>
    tpu.vector_store %arg6[%c0_27, %c1_28, %c0_29, %c0_30], %195 {strides = array<i32>} : memref<1x2x14x14xf32, #tpu.memory_space<vmem>>, vector<1x1x14x14xf32>,
    return
  }
  func.func @transform_0(%arg0: i32) -> (i32, i32, i32, i32) {
    %c0_i32 = arith.constant 0 : i32
    %c0_i32_0 = arith.constant 0 : i32
    %c0_i32_1 = arith.constant 0 : i32
    %c0_i32_2 = arith.constant 0 : i32
    return %arg0, %c0_i32, %c0_i32_0, %c0_i32_1 : i32, i32, i32, i32
  }
  func.func @transform_1(%arg0: i32) -> (i32, i32, i32, i32) {
    %c0_i32 = arith.constant 0 : i32
    %c0_i32_0 = arith.constant 0 : i32
    %c0_i32_1 = arith.constant 0 : i32
    %c0_i32_2 = arith.constant 0 : i32
    return %arg0, %c0_i32, %c0_i32_0, %c0_i32_1 : i32, i32, i32, i32
  }
  func.func @transform_2(%arg0: i32) -> i32 {
    %c0_i32 = arith.constant 0 : i32
    %c0_i32_0 = arith.constant 0 : i32
    return %c0_i32 : i32
  }
  func.func @transform_3(%arg0: i32) -> i32 {
    %c0_i32 = arith.constant 0 : i32
    %c0_i32_0 = arith.constant 0 : i32
    return %c0_i32 : i32
  }
  func.func @transform_4(%arg0: i32) -> i32 {
    %c0_i32 = arith.constant 0 : i32
    %c0_i32_0 = arith.constant 0 : i32
    return %c0_i32 : i32
  }
  func.func @transform_5(%arg0: i32) -> (i32, i32, i32, i32) {
    %c0_i32 = arith.constant 0 : i32
    %c0_i32_0 = arith.constant 0 : i32
    %c0_i32_1 = arith.constant 0 : i32
    %c0_i32_2 = arith.constant 0 : i32
    return %arg0, %c0_i32, %c0_i32_0, %c0_i32_1 : i32, i32, i32, i32
  }
}

</mosaic_0001>

<bundles_post_ra>
// kernel: tpu_custom_call.1
= control target key start
LH: loop header
LB: loop body
LE: loop exit
PB: predicated region body
PF: predicated region fallthrough
CT: control target
= control target key end

     0   :  { %s1434_s0 = inlined_call_operand.vmem [shape: f32[2,2,16,16], index: 0, kind: input, shape index: {}]   ;;  %s1435_s1 = inlined_call_operand.vmem [shape: f32[2,2,14,14], index: 1, kind: input, shape index: {}]   ;;  %s1436_s2 = inlined_call_operand.vmem [shape: f32[36], index: 2, kind: input, shape index: {}]   ;;  %s1437_s3 = inlined_call_operand.vmem [shape: f32[2], index: 3, kind: input, shape index: {}]   ;;  %s1438_s4 = inlined_call_operand.<no memory space> [shape: f32[1], index: 4, kind: input, shape index: {}]   ;;  %s1439_s5 = inlined_call_operand.vmem [shape: f32[2,2,14,14], index: 5, kind: output, shape index: {}]  }
   0x1   :  { %10 = sst [smem:[#allocation2]] %s1438_s4 }
   0x2   :  { %11 = vsyncpa [#allocation4], 0 }
   0x3   :  { %12 = vsyncpa [#allocation6], 0  ;;  %s1091_s20 = smov 0  }
   0x4 LB: > { %s1097_s21 = sadd.s32 4294967295, %s1052_s20   ;;  %p917_p0 = scmp.ge.s32.totalorder %s1052_s20, 1  ;;  %s1052_s20 = sphi %s1091_s20, %s18_s20  }
   0x5   : > { %p164_p1 = scmp.lt.s32.totalorder %s1052_s20, 3  ;;  %s177_s23 = sshll.u32 %s1436_s2, 4  ;;  %s178_s23 = int_to_ptr.vmem [resolvable:$true] %s177_s23 }
   0x6   : > { %p1440_p3 = scmp.eq.s32.totalorder %s1097_s21, 0  ;;  %s188_s27 = sshll.u32 %s1437_s3, 4  ;;  %s189_s27 = int_to_ptr.vmem [resolvable:$true] %s188_s27 }
   0x7   : > { %p1104_p2 = pnand %p917_p0, %p164_p1  ;;  %s1008_s29 = scalar_lea.vmem %s178_s23, 16 }
   0x8   : > { %p1009_p6 = scmp.ne.s32.totalorder %s178_s23, %s1008_s29  ;;  %p1016_p10 = scmp.lt.s32.totalorder %s178_s23, %s178_s23 }
   0x9   : > { %s1442_s24 = scalar_select %p1104_p2, 1, 0 }
   0xa   : > { %p985_p4 = pneg %p1104_p2  ;;  %p1017_p11 = scmp.lt.s32.totalorder %s1008_s29, %s1008_s29 }
   0xc   : > { %p1116_p5 = pnand %p1440_p3, %p985_p4  ;;  %p1018_p12 = por %p1017_p11, %p1016_p10 }
   0xe   : > { %p1010_p7 = pneg %p1116_p5 }
  0x10   : > { %p1011_p8 = pnand %p1010_p7, %p1009_p6 }
  0x12   : > { %p1012_p9 = pneg %p1011_p8 }
  0x14   : > { %p1019_p13 = pnand %p1018_p12, %p1012_p9 }
  0x16   : > { %1022 = shalt.err (!%p1019_p13)
}
  0x17   : > { %s1054_s30 = smov [#allocation3]   ;;  %s1023_s6 = scalar_lea.vmem %s189_s27, 16 }
  0x18   : > { %988 = dma.vmem_to_smem (!%p1116_p5), %s178_s23, 16, %s1054_s30, [#allocation4]  }
  0x19   : > { %p1024_p0 = scmp.ne.s32.totalorder %s189_s27, %s1023_s6  ;;  %p1031_p3 = scmp.lt.s32.totalorder %s189_s27, %s189_s27 }
  0x1a   : > { %p1032_p2 = scmp.lt.s32.totalorder %s1023_s6, %s1023_s6 }
  0x1b   : > { %p1026_p1 = pnand %p1024_p0, %p1010_p7 }
  0x1c   : > { %p1033_p6 = por %p1032_p2, %p1031_p3 }
  0x1d   : > { %p1027_p4 = pneg %p1026_p1 }
  0x1f   : > { %p1034_p8 = pnand %p1033_p6, %p1027_p4 }
  0x21   : > { %1037 = shalt.err (!%p1034_p8)
}
  0x22   : > { %s1055_s7 = smov [#allocation5]   ;;  %p1444_p9 = scmp.ne.s32.totalorder %s1442_s24, 0 }
  0x23   : > { %991 = dma.vmem_to_smem (!%p1116_p5), %s189_s27, 16, %s1055_s7, [#allocation6]  }
  0x24   : > { %220 = sbr.rel (%p1444_p9) target bundleno = 272 (0x110), region = 40  ;;  %p1445_p10 = scmp.eq.s32.totalorder (!%p1444_p9), %s1097_s21, 0 }
  0x29   : > { %1043 = dma.done.wait (%p1445_p10), [#allocation4], 16   ;;  %p1446_p11 = pmov %p1445_p10 }
  0x2a   : > { %p1447_p7 = pmov %p1445_p10 }
  0x2b   : > { %1045 = vsyncadd (%p1446_p11), [#allocation4], 4294967280 }
  0x2c   : > { %1047 = dma.done.wait (%p1447_p7), [#allocation6], 16   ;;  %p1448_p2 = pmov %p1447_p7 }
  0x2e   : > { %1049 = vsyncadd (%p1448_p2), [#allocation6], 4294967280 }
  0x2f   : > { %230 = sfence }
  0x30   : > { %p258_p3 = scmp.lt.s32.totalorder %s1097_s21, 1  ;;  %s933_s8 = sld [smem:[#allocation3 + $0x13]]  ;;  %vm355_vm0 = vcmask 1046528   ;;  %vm450_vm1 = vcmask 1045504   ;;  %vm810_vm2 = vcmask 111616   ;;  %vm808_vm3 = vcmask 113664  }
  0x31   : > { %s932_s9 = sld [smem:[#allocation3 + $0x1]]  ;;  %s1056_s18 = smov 127  }
  0x32   : > { %s1450_s21 = smov (!%p258_p3, %s1097_s21), 1  ;;  %s934_s11 = sld [smem:[#allocation3 + $0x2]] }
  0x33   : > { %s1138_s10 = sshll.u32 %s1450_s21, 5  ;;  %s938_s15 = sld [smem:[#allocation3 + $0x4]] }
  0x34   : > { %s1144_s14 = scalar_lea.vmem %s1434_s0, %s1138_s10  ;;  %s935_s16 = sld [smem:[#allocation3 + $0x14]] }
  0x35   : > { %v1147_v0 = vld [vmem:[%s1144_s14] sm:$0xff]  ;;  %v1150_v1 = vld [vmem:[%s1144_s14 + $0x8] sm:$0xff]  ;;  %s939_s17 = sld [smem:[#allocation3 + $0x16]]  ;;  %s1057_s21 = smov 126  }
  0x36   : > { %v308_v2 = vstv %s933_s8  ;;  %s940_s19 = sld [smem:[#allocation3 + $0x5]] }
  0x37   : > { %v309_v3 = vmul.f32 %v308_v2, %v1147_v0  ;;  %v294_v4 = vstv %s932_s9  ;;  %v310_v5 = vmul.f32 %v308_v2, %v1150_v1  ;;  %s941_s22 = sld [smem:[#allocation3 + $0x17]] }
  0x38   : > { %v295_v6 = vmul.f32 %v294_v4, %v1147_v0  ;;  %v322_v7 = vstv %s934_s11  ;;  %v296_v8 = vmul.f32 %v294_v4, %v1150_v1  ;;  %s944_s4 = sld [smem:[#allocation3 + $0x7]] }
  0x39   : > { %313 = vrot.lane.b32.xlu1 %v309_v3, %s1056_s18  ;;  %v324_v9 = vmul.f32 %v322_v7, %v1150_v1  ;;  %v377_v10 = vstv %s938_s15  ;;  %v323_v12 = vmul.f32 %v322_v7, %v1147_v0  ;;  %s945_s23 = sld [smem:[#allocation3 + $0x19]] }
  0x3a   : > { %299 = vrot.lane.b32.xlu0 %v295_v6, %s1056_s18  ;;  %v336_v11 = vstv %s935_s16  ;;  %v378_v13 = vmul.f32 %v377_v10, %v1147_v0  ;;  %v379_v14 = vmul.f32 %v377_v10, %v1150_v1  ;;  %s1176_s24 = sld [smem:[#allocation3 + $0x8]] }
  0x3b   : > { %v394_v15 = vstv %s939_s17  ;;  %v338_v16 = vmul.f32 %v336_v11, %v1150_v1  ;;  %v337_v17 = vmul.f32 %v336_v11, %v1147_v0  ;;  %s1183_s25 = sld [smem:[#allocation3 + $0x1a]] }
  0x3c   : > { %v395_v18 = vmul.f32 %v394_v15, %v1147_v0  ;;  %v383_v19 = vrot.slane %v379_v14, 1  ;;  %v382_v20 = vrot.slane %v378_v13, 1  ;;  %v396_v21 = vmul.f32 %v394_v15, %v1150_v1  ;;  %s936_s26 = sld [smem:[#allocation3 + $0x3]] }
  0x3d   : > { %315 = vrot.lane.b32.xlu1 %v310_v5, %s1056_s18  ;;  %v411_v22 = vstv %s940_s19  ;;  %v428_v28 = vstv %s941_s22  ;;  %s1190_s27 = sld [smem:[#allocation3 + $0x15]] }
  0x3e   : > { %301 = vrot.lane.b32.xlu0 %v296_v8, %s1056_s18  ;;  %v413_v23 = vmul.f32 %v411_v22, %v1150_v1  ;;  %v384_v24 = vsel %vm355_vm0, %v382_v20, %v383_v19  ;;  %v400_v25 = vrot.slane %v396_v21, 1  ;;  %v399_v26 = vrot.slane %v395_v18, 1  ;;  %s1196_s28 = sld [smem:[#allocation3 + $0x6]] }
  0x3f   : > { %v412_v27 = vmul.f32 %v411_v22, %v1147_v0  ;;  %v472_v30 = vstv %s944_s4  ;;  %v429_v33 = vmul.f32 %v428_v28, %v1147_v0  ;;  %v430_v34 = vmul.f32 %v428_v28, %v1150_v1  ;;  %s1201_s29 = sld [smem:[#allocation3 + $0x18]]  ;;  %v1259_v22 = vld [vmem:[%s1144_s14 + $0x18] sm:$0xff] }
  0x40   : > { %v417_v29 = vrot.slane %v413_v23, 1  ;;  %v401_v31 = vsel %vm355_vm0, %v399_v26, %v400_v25  ;;  %v473_v35 = vmul.f32 %v472_v30, %v1147_v0  ;;  %v474_v36 = vmul.f32 %v472_v30, %v1150_v1  ;;  %s1211_s30 = sld [smem:[#allocation3 + $0xa]] }
  0x41   : > { %329 = vrot.lane.b32.xlu1 %v324_v9, %s1057_s21  ;;  %v416_v32 = vrot.slane %v412_v27, 1  ;;  %v434_v38 = vrot.slane %v430_v34, 1  ;;  %v433_v39 = vrot.slane %v429_v33, 1  ;;  %v489_v40 = vstv %s945_s23  ;;  %s956_s6 = sld [smem:[#allocation3 + $0xc]] }
  0x42   : > { %327 = vrot.lane.b32.xlu0 %v323_v12, %s1057_s21  ;;  %v506_v41 = vstv %s1176_s24  ;;  %v490_v42 = vmul.f32 %v489_v40, %v1147_v0  ;;  %v491_v43 = vmul.f32 %v489_v40, %v1150_v1  ;;  %v478_v45 = vrot.slane %v474_v36, 2  ;;  %s1232_s7 = sld [smem:[#allocation3 + $0x1c]] }
  0x43   : > { %v418_v37 = vsel %vm355_vm0, %v416_v32, %v417_v29  ;;  %v435_v44 = vsel %vm355_vm0, %v433_v39, %v434_v38  ;;  %v477_v46 = vrot.slane %v473_v35, 2  ;;  %v508_v47 = vmul.f32 %v506_v41, %v1150_v1  ;;  %s957_s8 = sld [smem:[#allocation3 + $0x1e]] }
  0x44   : > { %v507_v48 = vmul.f32 %v506_v41, %v1147_v0  ;;  %v523_v49 = vstv %s1183_s25  ;;  %v495_v50 = vrot.slane %v491_v43, 2  ;;  %v494_v51 = vrot.slane %v490_v42, 2  ;;  %s1265_s9 = sld [smem:[#allocation3 + $0xb]] }
  0x45   : > { %343 = vrot.lane.b32.xlu1 %v338_v16, %s1057_s21  ;;  %v479_v52 = vsel %vm450_vm1, %v477_v46, %v478_v45  ;;  %v512_v53 = vrot.slane %v508_v47, 2  ;;  %v524_v54 = vmul.f32 %v523_v49, %v1147_v0  ;;  %v350_v55 = vstv %s936_s26  ;;  %s958_s11 = sld [smem:[#allocation3 + $0xd]] }
  0x46   : > { %341 = vrot.lane.b32.xlu0 %v337_v17, %s1057_s21  ;;  %v364_v56 = vstv %s1190_s27  ;;  %v511_v57 = vrot.slane %v507_v48, 2  ;;  %v525_v58 = vmul.f32 %v523_v49, %v1150_v1  ;;  %v351_v59 = vmul.f32 %v350_v55, %v1147_v0  ;;  %s1282_s12 = sld [smem:[#allocation3 + $0x1d]] }
  0x47   : > { %v1215_v60 = vmul.f32 %v350_v55, %v1150_v1  ;;  %v496_v61 = vsel %vm450_vm1, %v494_v51, %v495_v50  ;;  %v365_v62 = vmul.f32 %v364_v56, %v1147_v0  ;;  %v1221_v63 = vmul.f32 %v364_v56, %v1150_v1  ;;  %s1297_s13 = sld [smem:[#allocation3 + $0x1f]] }
  0x48   : > { %v445_v2 = vstv %s1196_s28  ;;  %v356_v3 = vrot.slane %v351_v59, 1  ;;  %v459_v9 = vstv %s1201_s29  ;;  %v528_v14 = vrot.slane %v524_v54, 2  ;;  %s962_s15 = sld [smem:[#allocation3 + $0xf]] }
  0x49   : > { %387 = vrot.lane.b32.xlu1 %v383_v19, %s1056_s18  ;;  %v357_v4 = vrot.slane %v1215_v60, 1  ;;  %v446_v5 = vmul.f32 %v445_v2, %v1147_v0  ;;  %v1227_v6 = vmul.f32 %v445_v2, %v1150_v1  ;;  %v369_v7 = vrot.slane %v365_v62, 1  ;;  %s1313_s16 = sld [smem:[#allocation3 + $0x20]] }
  0x4a   : > { %385 = vrot.lane.b32.xlu0 %v384_v24, %s1056_s18  ;;  %v370_v8 = vrot.slane %v1221_v63, 1  ;;  %v460_v13 = vmul.f32 %v459_v9, %v1147_v0  ;;  %v1248_v16 = vmul.f32 %v459_v9, %v1150_v1  ;;  %v513_v17 = vsel %vm450_vm1, %v511_v57, %v512_v53  ;;  %v1263_v24 = vld [vmem:[%s1144_s14 + $0x10] sm:$0xff]  ;;  %s1303_s14 = sld [smem:[#allocation3 + $0xe]] }
  0x4b   : > { %v1237_v10 = vsel %vm355_vm0, %v356_v3, %v357_v4  ;;  %v451_v11 = vrot.slane %v446_v5, 2  ;;  %v452_v12 = vrot.slane %v1227_v6, 2  ;;  %v529_v18 = vrot.slane %v525_v58, 2  ;;  %s963_s17 = sld [smem:[#allocation3 + $0x21]] }
  0x4c   : > { %v1245_v15 = vsel %vm355_vm0, %v369_v7, %v370_v8  ;;  %v464_v20 = vrot.slane %v460_v13, 2  ;;  %v465_v21 = vrot.slane %v1248_v16, 2  ;;  %v555_v23 = vstv %s1211_s30  ;;  %s1325_s19 = sld [smem:[#allocation3 + $0x10]] }
  0x4d   : > { %404 = vrot.lane.b32.xlu1 %v400_v25, %s1056_s18  ;;  %v1254_v19 = vsel %vm450_vm1, %v451_v11, %v452_v12  ;;  %v611_v25 = vstv %s956_s6  ;;  %v557_v30 = vmul.f32 %v1259_v22, %v555_v23  ;;  %v569_v33 = vstv %s1232_s7  ;;  %s965_s22 = sld [smem:[#allocation3 + $0x22]]  ;;  %s267_s6 = scalar_lea.vmem %s1435_s1, %s1138_s10 }
  0x4e   : > { %402 = vrot.lane.b32.xlu0 %v401_v31, %s1056_s18  ;;  %v1271_v26 = vsel %vm450_vm1, %v464_v20, %v465_v21  ;;  %v612_v27 = vmul.f32 %v1263_v24, %v611_v25  ;;  %v1275_v28 = vmul.f32 %v1259_v22, %v611_v25  ;;  %v624_v34 = vstv %s957_s8  ;;  %s966_s4 = sld [smem:[#allocation3 + $0x11]] }
  0x4f   : > { %v556_v35 = vmul.f32 %v1263_v24, %v555_v23  ;;  %v571_v39 = vmul.f32 %v1259_v22, %v569_v33  ;;  %v583_v42 = vstv %s1265_s9  ;;  %v570_v43 = vmul.f32 %v1263_v24, %v569_v33  ;;  %s967_s23 = sld [smem:[#allocation3 + $0x23]]  ;;  %s272_s9 = scalar_lea.vmem %s1439_s5, %s1138_s10 }
  0x50   : > { %v616_v31 = vrot.slane %v612_v27, 1  ;;  %v617_v32 = vrot.slane %v1275_v28, 1  ;;  %v637_v46 = vstv %s958_s11  ;;  %v597_v47 = vstv %s1282_s12  ;;  %s281_s24 = sld [smem:[#allocation3]] }
  0x51   : > { %421 = vrot.lane.b32.xlu1 %v417_v29, %s1057_s21  ;;  %v530_v29 = vsel %vm450_vm1, %v528_v14, %v529_v18  ;;  %v584_v48 = vmul.f32 %v1263_v24, %v583_v42  ;;  %v638_v49 = vmul.f32 %v1263_v24, %v637_v46  ;;  %v599_v51 = vmul.f32 %v1259_v22, %v597_v47  ;;  %s931_s25 = sld [smem:[#allocation3 + $0x12]] }
  0x52   : > { %419 = vrot.lane.b32.xlu0 %v418_v37, %s1057_s21  ;;  %v1289_v36 = vsel %vm355_vm0, %v616_v31, %v617_v32  ;;  %v625_v37 = vmul.f32 %v1263_v24, %v624_v34  ;;  %v598_v54 = vmul.f32 %v1263_v24, %v597_v47  ;;  %v671_v55 = vstv %s1303_s14  ;;  %s273_s26 = sld [smem:[#allocation5]] }
  0x53   : > { %v642_v59 = vrot.slane %v638_v49, 1  ;;  %v688_v5 = vstv %s1313_s16  ;;  %v718_v7 = vstv %s963_s17  ;;  %v672_v9 = vmul.f32 %v1263_v24, %v671_v55  ;;  %s930_s27 = sld [smem:[#allocation5 + $0x1]] }
  0x54   : > { %v629_v40 = vrot.slane %v625_v37, 1  ;;  %v719_v13 = vmul.f32 %v1263_v24, %v718_v7  ;;  %v1345_v14 = vmul.f32 %v1259_v22, %v718_v7  ;;  %v673_v23 = vmul.f32 %v1259_v22, %v671_v55  ;;  %s798_s28 = sld [smem:[#allocation2]] }
  0x55   : > { %438 = vrot.lane.b32.xlu1 %v434_v38, %s1057_s21  ;;  %v1293_v38 = vmul.f32 %v1259_v22, %v624_v34  ;;  %v689_v37 = vmul.f32 %v1263_v24, %v688_v5 }
  0x56   : > { %436 = vrot.lane.b32.xlu0 %v435_v44, %s1057_s21  ;;  %v723_v25 = vrot.slane %v719_v13, 2  ;;  %v724_v27 = vrot.slane %v1345_v14, 2  ;;  %v677_v34 = vrot.slane %v673_v23, 1 }
  0x57   : > { %v630_v41 = vrot.slane %v1293_v38, 1 }
  0x58   : > { %v1357_v31 = vsel %vm450_vm1, %v723_v25, %v724_v27 }
  0x59   : > { %482 = vrot.lane.b32.xlu1 %v478_v45, %s1056_s18  ;;  %v1308_v44 = vsel %vm355_vm0, %v629_v40, %v630_v41  ;;  %v585_v45 = vmul.f32 %v1259_v22, %v583_v42 }
  0x5a   : > { %480 = vrot.lane.b32.xlu0 %v479_v52, %s1056_s18  ;;  %v654_v52 = vstv %s1297_s13 }
  0x5b   : > { %v656_v62 = vmul.f32 %v1259_v22, %v654_v52 }
  0x5d   : > { %499 = vrot.lane.b32.xlu1 %v495_v50, %s1056_s18  ;;  %v639_v50 = vmul.f32 %v1259_v22, %v637_v46  ;;  %v748_v46 = vstv %s965_s22 }
  0x5e   : > { %497 = vrot.lane.b32.xlu0 %v496_v61, %s1056_s18  ;;  %v655_v61 = vmul.f32 %v1263_v24, %v654_v52  ;;  %v750_v47 = vmul.f32 %v1259_v22, %v748_v46  ;;  %v765_v52 = vstv %s966_s4 }
  0x5f   : > { %v643_v58 = vrot.slane %v639_v50, 1 }
  0x60   : > { %v659_v20 = vrot.slane %v655_v61, 1 }
  0x61   : > { %516 = vrot.lane.b32.xlu1 %v512_v53, %s1057_s21  ;;  %v705_v53 = vstv %s962_s15 }
  0x62   : > { %514 = vrot.lane.b32.xlu0 %v513_v17, %s1057_s21  ;;  %v706_v56 = vmul.f32 %v1263_v24, %v705_v53  ;;  %v1329_v57 = vmul.f32 %v1259_v22, %v705_v53  ;;  %v644_v17 = vsel %vm355_vm0, %v642_v59, %v643_v58  ;;  %v754_v53 = vrot.slane %v750_v47, 2 }
  0x63   : > { %v767_v59 = vmul.f32 %v1259_v22, %v765_v52 }
  0x64   : > { %v710_v2 = vrot.slane %v706_v56, 2  ;;  %v711_v3 = vrot.slane %v1329_v57, 2 }
  0x65   : > { %533 = vrot.lane.b32.xlu1 %v529_v18, %s1057_s21  ;;  %v660_v18 = vrot.slane %v656_v62, 1 }
  0x66   : > { %531 = vrot.lane.b32.xlu0 %v530_v29, %s1057_s21  ;;  %v1341_v11 = vsel %vm450_vm1, %v710_v2, %v711_v3  ;;  %v690_v29 = vmul.f32 %v1259_v22, %v688_v5  ;;  %v771_v2 = vrot.slane %v767_v59, 2 }
  0x67   : > { %v661_v33 = vsel %vm355_vm0, %v659_v20, %v660_v18  ;;  %v282_v20 = vstv %s281_s24 }
  0x68   : > { %v283_v25 = vmul.f32 %v282_v20, %v1147_v0 }
  0x69   : > { %562 = vrot.lane.b32.xlu1 %v557_v30, %s1056_s18  ;;  %v731_v30 = vstv %s1325_s19 }
  0x6a   : > { %560 = vrot.lane.b32.xlu0 %v556_v35, %s1056_s18  ;;  %v676_v35 = vrot.slane %v672_v9, 1  ;;  %v732_v40 = vmul.f32 %v1263_v24, %v731_v30 }
  0x6c   : > { %v678_v42 = vsel %vm355_vm0, %v676_v35, %v677_v34  ;;  %v736_v50 = vrot.slane %v732_v40, 2 }
  0x6d   : > { %576 = vrot.lane.b32.xlu1 %v571_v39, %s1056_s18  ;;  %v694_v39 = vrot.slane %v690_v29, 1  ;;  %v288_v29 = vstv %s931_s25 }
  0x6e   : > { %574 = vrot.lane.b32.xlu0 %v570_v43, %s1056_s18  ;;  %v693_v43 = vrot.slane %v689_v37, 1  ;;  %v289_v35 = vmul.f32 %v288_v29, %v1147_v0 }
  0x71   : > { %590 = vrot.lane.b32.xlu1 %v585_v45, %s1057_s21  ;;  %v733_v45 = vmul.f32 %v1259_v22, %v731_v30  ;;  %v274_v30 = vstv %s273_s26 }
  0x72   : > { %588 = vrot.lane.b32.xlu0 %v584_v48, %s1057_s21  ;;  %v695_v48 = vsel %vm355_vm0, %v693_v43, %v694_v39  ;;  %v285_v37 = vadd.f32 %v283_v25, %v274_v30 }
  0x73   : > { %v737_v49 = vrot.slane %v733_v45, 2 }
  0x75   : > { %604 = vrot.lane.b32.xlu1 %v599_v51, %s1057_s21  ;;  %v749_v51 = vmul.f32 %v1263_v24, %v748_v46  ;;  %v738_v55 = vsel %vm450_vm1, %v736_v50, %v737_v49 }
  0x76   : > { %602 = vrot.lane.b32.xlu0 %v598_v54, %s1057_s21  ;;  %v782_v54 = vstv %s967_s23 }
  0x77   : > { %v753_v56 = vrot.slane %v749_v51, 2  ;;  %v783_v61 = vmul.f32 %v1263_v24, %v782_v54  ;;  %v784_v7 = vmul.f32 %v1259_v22, %v782_v54 }
  0x79   : > { %647 = vrot.lane.b32.xlu1 %v643_v58, %s1056_s18  ;;  %v766_v58 = vmul.f32 %v1263_v24, %v765_v52  ;;  %v755_v62 = vsel %vm450_vm1, %v753_v56, %v754_v53  ;;  %v788_v13 = vrot.slane %v784_v7, 2  ;;  %v284_v52 = vmul.f32 %v282_v20, %v1150_v1 }
  0x7a   : > { %645 = vrot.lane.b32.xlu0 %v644_v17, %s1056_s18  ;;  %v787_v17 = vrot.slane %v783_v61, 2  ;;  %v290_v56 = vmul.f32 %v288_v29, %v1150_v1 }
  0x7b   : > { %v770_v5 = vrot.slane %v766_v58, 2  ;;  %v286_v58 = vadd.f32 %v284_v52, %v274_v30 }
  0x7d   : > { %664 = vrot.lane.b32.xlu1 %v660_v18, %s1056_s18  ;;  %v772_v9 = vsel %vm450_vm1, %v770_v5, %v771_v2  ;;  %v789_v18 = vsel %vm450_vm1, %v787_v17, %v788_v13 }
  0x7e   : > { %662 = vrot.lane.b32.xlu0 %v661_v33, %s1056_s18 }
  0x81   : > { %681 = vrot.lane.b32.xlu1 %v677_v34, %s1057_s21 }
  0x82   : > { %679 = vrot.lane.b32.xlu0 %v678_v42, %s1057_s21 }
  0x85   : > { %698 = vrot.lane.b32.xlu1 %v694_v39, %s1057_s21  ;;  %v277_v39 = vstv %s930_s27 }
  0x86   : > { %696 = vrot.lane.b32.xlu0 %v695_v48, %s1057_s21  ;;  %v291_v43 = vadd.f32 %v289_v35, %v277_v39 }
  0x89   : > { %741 = vrot.lane.b32.xlu1 %v737_v49, %s1056_s18 }
  0x8a   : > { %739 = vrot.lane.b32.xlu0 %v738_v55, %s1056_s18 }
  0x8d   : > { %758 = vrot.lane.b32.xlu1 %v754_v53, %s1056_s18 }
  0x8e   : > { %756 = vrot.lane.b32.xlu0 %v755_v62, %s1056_s18  ;;  %v292_v62 = vadd.f32 %v290_v56, %v277_v39  ;;  %s950_s18 = sld [smem:[#allocation3 + $0x9]] }
  0x91   : > { %775 = vrot.lane.b32.xlu1 %v771_v2, %s1057_s21 }
  0x92   : > { %773 = vrot.lane.b32.xlu0 %v772_v9, %s1057_s21 }
  0x95   : > { %792 = vrot.lane.b32.xlu1 %v788_v13, %s1057_s21 }
  0x96   : > { %790 = vrot.lane.b32.xlu0 %v789_v18, %s1057_s21  ;;  %s951_s21 = sld [smem:[#allocation3 + $0x1b]] }
  0xab   : > { %v314_v23 = vpop.permute.xlu1 %313 }
  0xac   : > { %v300_v33 = vpop.permute.xlu0 %299  ;;  %v319_v49 = vadd.f32 %v314_v23, %v291_v43  ;;  %v543_v43 = vstv %s950_s18 }
  0xad   : > { %v305_v45 = vadd.f32 %v300_v33, %v285_v37 }
  0xaf   : > { %v316_v34 = vpop.permute.xlu1 %315 }
  0xb0   : > { %v302_v40 = vpop.permute.xlu0 %301 }
  0xb1   : > { %v306_v2 = vadd.f32 %v302_v40, %v286_v58 }
  0xb3   : > { %v330_v42 = vpop.permute.xlu1 %329 }
  0xb4   : > { %v328_v46 = vpop.permute.xlu0 %327  ;;  %v334_v7 = vadd.f32 %v330_v42, %v306_v2 }
  0xb5   : > { %v333_v47 = vadd.f32 %v328_v46, %v305_v45  ;;  %v545_v46 = vmul.f32 %v1259_v22, %v543_v43 }
  0xb7   : > { %v344_v48 = vpop.permute.xlu1 %343  ;;  %v361_v50 = vadd.f32 %v1237_v10, %v333_v47  ;;  %v320_v10 = vadd.f32 %v316_v34, %v292_v62 }
  0xb8   : > { %v342_v51 = vpop.permute.xlu0 %341 }
  0xb9   : > { %v347_v53 = vadd.f32 %v342_v51, %v319_v49  ;;  %v348_v20 = vadd.f32 %v344_v48, %v320_v10  ;;  %v549_v48 = vstv %s951_s21 }
  0xba   : > { %v551_v6 = vmul.f32 %v1259_v22, %v549_v48  ;;  %v550_v56 = vmul.f32 %v1263_v24, %v549_v48 }
  0xbb   : > { %v388_v54 = vpop.permute.xlu1 %387  ;;  %v374_v55 = vadd.f32 %v1245_v15, %v347_v53  ;;  %v362_v15 = vadd.f32 %v357_v4, %v334_v7  ;;  %v375_v35 = vadd.f32 %v370_v8, %v348_v20 }
  0xbc   : > { %v386_v0 = vpop.permute.xlu0 %385 }
  0xbd   : > { %v391_v9 = vadd.f32 %v386_v0, %v361_v50  ;;  %v392_v29 = vadd.f32 %v388_v54, %v362_v15 }
  0xbf   : > { %v405_v59 = vpop.permute.xlu1 %404 }
  0xc0   : > { %v403_v61 = vpop.permute.xlu0 %402  ;;  %v409_v40 = vadd.f32 %v405_v59, %v375_v35 }
  0xc1   : > { %v408_v23 = vadd.f32 %v403_v61, %v374_v55 }
  0xc3   : > { %v422_v5 = vpop.permute.xlu1 %421 }
  0xc4   : > { %v420_v13 = vpop.permute.xlu0 %419  ;;  %v426_v37 = vadd.f32 %v422_v5, %v392_v29 }
  0xc5   : > { %v425_v17 = vadd.f32 %v420_v13, %v391_v9 }
  0xc6   : > { %v457_v4 = vadd.f32 %v452_v12, %v426_v37 }
  0xc7   : > { %v439_v18 = vpop.permute.xlu1 %438  ;;  %v456_v1 = vadd.f32 %v1254_v19, %v425_v17 }
  0xc8   : > { %v437_v25 = vpop.permute.xlu0 %436  ;;  %v443_v60 = vadd.f32 %v439_v18, %v409_v40 }
  0xc9   : > { %v442_v30 = vadd.f32 %v437_v25, %v408_v23 }
  0xca   : > { %v470_v63 = vadd.f32 %v465_v21, %v443_v60 }
  0xcb   : > { %v483_v33 = vpop.permute.xlu1 %482  ;;  %v469_v34 = vadd.f32 %v1271_v26, %v442_v30  ;;  %v544_v26 = vmul.f32 %v1263_v24, %v543_v43 }
  0xcc   : > { %v481_v39 = vpop.permute.xlu0 %480  ;;  %v487_v45 = vadd.f32 %v483_v33, %v457_v4 }
  0xcd   : > { %v486_v49 = vadd.f32 %v481_v39, %v456_v1 }
  0xcf   : > { %v500_v42 = vpop.permute.xlu1 %499 }
  0xd0   : > { %v498_v19 = vpop.permute.xlu0 %497  ;;  %v504_v51 = vadd.f32 %v500_v42, %v470_v63  ;;  %v800_v63 = vld [vmem:[%s267_s6 + $0x8] sm:$0x3f] }
  0xd1   : > { %v503_v54 = vadd.f32 %v498_v19, %v469_v34 }
  0xd3   : > { %v517_v47 = vpop.permute.xlu1 %516 }
  0xd4   : > { %v521_v8 = vadd.f32 %v517_v47, %v487_v45  ;;  %v515_v50 = vpop.permute.xlu0 %514 }
  0xd5   : > { %v520_v52 = vadd.f32 %v515_v50, %v486_v49  ;;  %v799_v50 = vld [vmem:[%s267_s6] sm:$0xff] }
  0xd6   : > { %v547_v53 = vadd.f32 %v545_v46, %v521_v8  ;;  %v801_v8 = vstv %s798_s28 }
  0xd7   : > { %v534_v12 = vpop.permute.xlu1 %533  ;;  %v546_v0 = vadd.f32 %v544_v26, %v520_v52 }
  0xd8   : > { %v538_v55 = vadd.f32 %v534_v12, %v504_v51  ;;  %v532_v58 = vpop.permute.xlu0 %531  ;;  %v803_v51 = vmul.f32 %v801_v8, %v800_v63  ;;  %v968_v12 = vld [vmem:[%s267_s6 + $0x10] sm:$0xff] }
  0xd9   : > { %v537_v59 = vadd.f32 %v532_v58, %v503_v54 }
  0xda   : > { %v553_v61 = vadd.f32 %v551_v6, %v538_v55  ;;  %v802_v6 = vmul.f32 %v801_v8, %v799_v50 }
  0xdb   : > { %v563_v16 = vpop.permute.xlu1 %562  ;;  %v552_v21 = vadd.f32 %v550_v56, %v537_v59  ;;  %v817_v59 = vmul.f32 %v968_v12, %v801_v8 }
  0xdc   : > { %v561_v62 = vpop.permute.xlu0 %560  ;;  %v567_v7 = vadd.f32 %v563_v16, %v547_v53  ;;  %v969_v53 = vld [vmem:[%s267_s6 + $0x18] sm:$0x3f] }
  0xdd   : > { %v566_v13 = vadd.f32 %v561_v62, %v546_v0  ;;  %v818_v56 = vmul.f32 %v969_v53, %v801_v8 }
  0xdf   : > { %v577_v2 = vpop.permute.xlu1 %576 }
  0xe0   : > { %v575_v5 = vpop.permute.xlu0 %574  ;;  %v581_v22 = vadd.f32 %v577_v2, %v553_v61 }
  0xe1   : > { %v580_v24 = vadd.f32 %v575_v5, %v552_v21 }
  0xe3   : > { %v591_v9 = vpop.permute.xlu1 %590 }
  0xe4   : > { %v595_v10 = vadd.f32 %v591_v9, %v567_v7  ;;  %v589_v17 = vpop.permute.xlu0 %588 }
  0xe5   : > { %v594_v18 = vadd.f32 %v589_v17, %v566_v13 }
  0xe6   : > { %v622_v20 = vadd.f32 %v617_v32, %v595_v10 }
  0xe7   : > { %v605_v15 = vpop.permute.xlu1 %604  ;;  %v621_v1 = vadd.f32 %v1289_v36, %v594_v18 }
  0xe8   : > { %v609_v23 = vadd.f32 %v605_v15, %v581_v22  ;;  %v603_v25 = vpop.permute.xlu0 %602 }
  0xe9   : > { %v608_v29 = vadd.f32 %v603_v25, %v580_v24 }
  0xea   : > { %v635_v30 = vadd.f32 %v630_v41, %v609_v23 }
  0xeb   : > { %v648_v33 = vpop.permute.xlu1 %647  ;;  %v634_v35 = vadd.f32 %v1308_v44, %v608_v29 }
  0xec   : > { %v646_v37 = vpop.permute.xlu0 %645  ;;  %v652_v40 = vadd.f32 %v648_v33, %v622_v20 }
  0xed   : > { %v651_v28 = vadd.f32 %v646_v37, %v621_v1 }
  0xef   : > { %v665_v34 = vpop.permute.xlu1 %664 }
  0xf0   : > { %v663_v39 = vpop.permute.xlu0 %662  ;;  %v669_v60 = vadd.f32 %v665_v34, %v635_v30 }
  0xf1   : > { %v668_v38 = vadd.f32 %v663_v39, %v634_v35 }
  0xf3   : > { %v682_v42 = vpop.permute.xlu1 %681 }
  0xf4   : > { %v686_v32 = vadd.f32 %v682_v42, %v652_v40  ;;  %v680_v43 = vpop.permute.xlu0 %679 }
  0xf5   : > { %v685_v4 = vadd.f32 %v680_v43, %v651_v28 }
  0xf6   : > { %v716_v36 = vadd.f32 %v711_v3, %v686_v32 }
  0xf7   : > { %v699_v19 = vpop.permute.xlu1 %698  ;;  %v715_v44 = vadd.f32 %v1341_v11, %v685_v4 }
  0xf8   : > { %v703_v41 = vadd.f32 %v699_v19, %v669_v60  ;;  %v697_v45 = vpop.permute.xlu0 %696 }
  0xf9   : > { %v702_v46 = vadd.f32 %v697_v45, %v668_v38 }
  0xfa   : > { %v729_v47 = vadd.f32 %v724_v27, %v703_v41 }
  0xfb   : > { %v742_v48 = vpop.permute.xlu1 %741  ;;  %v728_v49 = vadd.f32 %v1357_v31, %v702_v46 }
  0xfc   : > { %v740_v57 = vpop.permute.xlu0 %739  ;;  %v746_v11 = vadd.f32 %v742_v48, %v716_v36 }
  0xfd   : > { %v745_v14 = vadd.f32 %v740_v57, %v715_v44 }
  0xff   : > { %v759_v3 = vpop.permute.xlu1 %758 }
 0x100   : > { %v757_v26 = vpop.permute.xlu0 %756  ;;  %v763_v54 = vadd.f32 %v759_v3, %v729_v47 }
 0x101   : > { %v762_v61 = vadd.f32 %v757_v26, %v728_v49 }
 0x103   : > { %v776_v52 = vpop.permute.xlu1 %775 }
 0x104   : > { %v780_v27 = vadd.f32 %v776_v52, %v746_v11  ;;  %v774_v31 = vpop.permute.xlu0 %773 }
 0x105   : > { %v779_v0 = vadd.f32 %v774_v31, %v745_v14 }
 0x106   : > { %v805_v55 = vadd.f32 %v803_v51, %v780_v27 }
 0x107   : > { %v793_v58 = vpop.permute.xlu1 %792  ;;  %v804_v21 = vadd.f32 %v802_v6, %v779_v0 }
 0x108   : > { %v807_v16 = vmax.f32 %v805_v55, 0.0  ;;  %v797_v62 = vadd.f32 %v793_v58, %v763_v54  ;;  %v791_v2 = vpop.permute.xlu0 %790 }
 0x109   : > { %v806_v5 = vmax.f32 %v804_v21, 0.0  ;;  %v796_v9 = vadd.f32 %v791_v2, %v762_v61 }
 0x10a   : > { %811 = vst.msk [vmem:[%s272_s9 + $0x8] sm:$0x3f] %vm810_vm2, %v807_v16  ;;  %v820_v7 = vadd.f32 %v818_v56, %v797_v62 }
 0x10b   : > { %809 = vst.msk [vmem:[%s272_s9] sm:$0xff] %vm808_vm3, %v806_v5  ;;  %v819_v10 = vadd.f32 %v817_v59, %v796_v9 }
 0x10c   : > { %v822_v13 = vmax.f32 %v820_v7, 0.0 }
 0x10d   : > { %v821_v17 = vmax.f32 %v819_v10, 0.0 }
 0x10e   : > { %971 = vst.msk [vmem:[%s272_s9 + $0x18] sm:$0x3f] %vm810_vm2, %v822_v13 }
 0x10f   : > { %970 = vst.msk [vmem:[%s272_s9 + $0x10] sm:$0xff] %vm808_vm3, %v821_v17 }
 0x110 PF: > { %s18_s20 = sadd.s32 1, %s1052_s20  }
 0x111   : > { %p15_p5 = scmp.ge.s32.totalorder %s18_s20, 4  }
 0x113   :  { %17 = sbr.rel (!%p15_p5) target bundleno = 4 (0x4), region = 85 }
 0x118   :  { %847 = vsyncpa [#allocation4], 1 }
 0x119   :  { %849 = vsyncpa [#allocation4 + $0x1], 1 }
 0x11a   :  { %850 = vsyncpa [#allocation6], 1 }

</bundles_post_ra>
